<compile_context>
chip_gen: v6e
topology: v6e:2x2x1
jax: 0.10.0
libtpu: 0.0.40
codegen_flags: <defaults>
</compile_context>

<pallas_src>
import math
import functools

import jax
import jax.numpy as jnp
from jax.experimental import pallas as pl
from jax.experimental.pallas import tpu as pltpu


def _head_attention_kernel(x_ref, pe_ref, w_ref, b_ref, o_ref, *, mxu_dtype):
    """One (head, batch) pair: pe-add, fused KQV projection, (k@q^T) softmax, @v.

    x_ref : (S, D)    this head's token slab for this batch element
    pe_ref: (S, D)    this head's positional-encoding slice
    w_ref : (D, 3D)   fused [Wk^T | Wq^T / d_model | Wv^T]
    b_ref : (1, 3D)   fused [bk   | bq   / d_model | bv  ]
    o_ref : (S, D)
    """
    S, D = x_ref.shape

    # positional-encoding add in f32 (VPU; v5e has no bf16 VPU path anyway)
    x = x_ref[...].astype(jnp.float32) + pe_ref[...].astype(jnp.float32)      # (S,D)

    # single fused projection: (S, D) @ (D, 3D); f32 accumulation on the MXU
    kqv = jnp.dot(x.astype(mxu_dtype), w_ref[...].astype(mxu_dtype),
                  preferred_element_type=jnp.float32)                         # (S,3D)
    kqv = kqv + b_ref[...].astype(jnp.float32)

    k = kqv[:, 0 * D:1 * D]
    q = kqv[:, 1 * D:2 * D]          # 1/d_model already folded into Wq / bq
    v = kqv[:, 2 * D:3 * D]

    # scores = (k @ q^T) / d_model  (module's convention: k first, plain 1/D
    # scale).  NT matmul -> one XLU transpose of q; acceptable unless a bundle
    # dump shows the XLU slot binding.
    s = jnp.dot(k.astype(mxu_dtype), q.astype(mxu_dtype).T,
                preferred_element_type=jnp.float32)                           # (S,S)

    # softmax over the q-token axis; normalisation deferred to the (S,D) output
    s = s - jnp.max(s, axis=-1, keepdims=True)
    p = jnp.exp(s)
    l = jnp.sum(p, axis=-1, keepdims=True)                                    # (S,1)

    o = jnp.dot(p.astype(mxu_dtype), v.astype(mxu_dtype),
                preferred_element_type=jnp.float32)                           # (S,D)
    o = o * pl.reciprocal(l, approx=True)        # EUP rcp, scales S*D not S*S
    o_ref[...] = o.astype(o_ref.dtype)


def fuse_head_params(wk_t, wq_t, wv_t, bk, bq, bv):
    """One-time parameter preprocessing (hoisted out of the forward path).

    wk_t/wq_t/wv_t: (H, D, D) pre-transposed (in, out); bk/bq/bv: (H, D).
    Folds the 1/d_model score scale into the Q projection and fuses K|Q|V.
    Returns w_fused (H, D, 3D), b_fused (H, 1, 3D).
    """
    H, D, _ = wk_t.shape
    inv_d = jnp.asarray(1.0 / D, dtype=wq_t.dtype)
    w_fused = jnp.concatenate([wk_t, wq_t * inv_d, wv_t], axis=-1)            # (H,D,3D)
    b_fused = jnp.concatenate([bk, bq * inv_d, bv], axis=-1).reshape(H, 1, 3 * D)
    return w_fused, b_fused


def head_forward(x, pe, w_fused, b_fused, *, nheads, mxu_dtype=jnp.bfloat16):
    """x: (B, T, D); pe: (T, D); w_fused: (H, D, 3D); b_fused: (H, 1, 3D).

    Returns (B, T, D) — the concat over heads along the token axis.
    mxu_dtype=bfloat16 hits the native MXU path on v5e/v6e/v7x (f32
    accumulation preserved); pass jnp.float32 for bit-faithful numerics.
    """
    B, T, D = x.shape
    H = nheads
    assert T % H == 0
    S = T // H

    # b (t c) d -> b t c d   (head index is the OUTER factor of the token axis)
    x4 = x.reshape(B, H, S, D)
    pe3 = pe.reshape(H, S, D)

    # VMEM budget: double-buffered per-step blocks + in-kernel activations,
    # clamped to 85% of the physical VMEM of this generation (64 MiB on v7x).
    fbytes = 4
    dma_bufs = 2 * (S * D + S * D + D * 3 * D + 3 * D + S * D)
    activ = 6 * S * D + 2 * S * S + 3 * S * D
    working_set = (dma_bufs + activ) * fbytes
    try:
        phys_vmem = pltpu.get_tpu_info().vmem_capacity_bytes
    except Exception:                      # pragma: no cover - conservative default
        phys_vmem = 64 << 20
    vmem_limit = int(min(0.85 * phys_vmem, max(2 * working_set, 32 << 20)))

    kernel = functools.partial(_head_attention_kernel, mxu_dtype=mxu_dtype)

    out4 = pl.pallas_call(
        kernel,
        out_shape=jax.ShapeDtypeStruct((B, H, S, D), x.dtype),
        grid_spec=pltpu.PrefetchScalarGridSpec(
            num_scalar_prefetch=0,
            grid=(H, B),                                   # b is the inner axis:
            in_specs=[                                     # W/b not re-DMA'd over b
                pl.BlockSpec((None, None, S, D), lambda h, b: (b, h, 0, 0)),  # x
                pl.BlockSpec((None, S, D),       lambda h, b: (h, 0, 0)),     # pe
                pl.BlockSpec((None, D, 3 * D),   lambda h, b: (h, 0, 0)),     # W
                pl.BlockSpec((None, 1, 3 * D),   lambda h, b: (h, 0, 0)),     # b
            ],
            out_specs=pl.BlockSpec((None, None, S, D), lambda h, b: (b, h, 0, 0)),
        ),
        compiler_params=pltpu.CompilerParams(
            dimension_semantics=("parallel", "parallel"),  # v7x: 2 TCs split H*B
            vmem_limit_bytes=vmem_limit),
    )(x4, pe3, w_fused, b_fused)

    # concat(dim=-2) over heads == flatten (H, S) back to T
    return out4.reshape(B, T, D)


def make_positional_encoding(dim, d_model, dtype=jnp.float32):
    pos = jnp.arange(dim, dtype=jnp.float32)[:, None]                         # (dim, 1)
    div_tm = jnp.exp(jnp.arange(0, d_model, 2, dtype=jnp.float32)
                     * (-(math.log(10000.0) / d_model)))                      # (d_model/2,)
    pe = jnp.zeros((dim, d_model), dtype=jnp.float32)
    pe = pe.at[:, 0::2].set(jnp.sin(pos * div_tm))
    pe = pe.at[:, 1::2].set(jnp.cos(pos * div_tm))
    return pe.astype(dtype)


def reference_forward(x, pe, wk_t, wq_t, wv_t, bk, bq, bv, *, nheads):
    """Pure-JAX reference mirroring the PyTorch module."""
    B, T, D = x.shape
    S = T // nheads
    xh = (x + pe[None]).reshape(B, nheads, S, D)
    outs = []
    for h in range(nheads):
        xi = xh[:, h]                                                         # (B, S, D)
        k = xi @ wk_t[h] + bk[h]
        q = xi @ wq_t[h] + bq[h]
        v = xi @ wv_t[h] + bv[h]
        s = (k @ jnp.swapaxes(q, -1, -2)) / D
        p = jax.nn.softmax(s, axis=-1)
        outs.append(p @ v)
    return jnp.concatenate(outs, axis=-2)


if __name__ == "__main__":
    B, DIM, D_MODEL, NHEADS = 2, 8, 32, 2

    key = jax.random.PRNGKey(0)
    keys = jax.random.split(key, 1 + 6 * NHEADS)
    x = jax.random.normal(keys[0], (B, DIM, D_MODEL), dtype=jnp.float32)

    # deterministic nn.Linear-style init: U(-1/sqrt(fan_in), 1/sqrt(fan_in))
    bound = 1.0 / math.sqrt(D_MODEL)
    def uni(k, shape):
        return jax.random.uniform(k, shape, jnp.float32, -bound, bound)

    # per-head weights; stored transposed (in, out) so kernel does x @ W^T + b
    wk_t = jnp.stack([uni(keys[1 + 6 * h + 0], (D_MODEL, D_MODEL)).T for h in range(NHEADS)])
    wq_t = jnp.stack([uni(keys[1 + 6 * h + 1], (D_MODEL, D_MODEL)).T for h in range(NHEADS)])
    wv_t = jnp.stack([uni(keys[1 + 6 * h + 2], (D_MODEL, D_MODEL)).T for h in range(NHEADS)])
    bk = jnp.stack([uni(keys[1 + 6 * h + 3], (D_MODEL,)) for h in range(NHEADS)])
    bq = jnp.stack([uni(keys[1 + 6 * h + 4], (D_MODEL,)) for h in range(NHEADS)])
    bv = jnp.stack([uni(keys[1 + 6 * h + 5], (D_MODEL,)) for h in range(NHEADS)])

    pe = make_positional_encoding(DIM, D_MODEL)
    ref = reference_forward(x, pe, wk_t, wq_t, wv_t, bk, bq, bv, nheads=NHEADS)

    # one-time parameter fusion (outside the per-call path)
    w_fused, b_fused = fuse_head_params(wk_t, wq_t, wv_t, bk, bq, bv)

    # default path: bf16 MXU inputs, f32 accumulation (few-permille tolerance)
    out_bf16 = jax.block_until_ready(
        head_forward(x, pe, w_fused, b_fused, nheads=NHEADS))
    assert out_bf16.shape == (B, DIM, D_MODEL)
    assert jnp.allclose(out_bf16, ref, rtol=3e-2, atol=3e-2), \
        "bf16-MXU kernel mismatch vs pure-JAX reference"

    # f32 path: bit-faithful MXU numerics (approx reciprocal only)
    out_f32 = jax.block_until_ready(
        head_forward(x, pe, w_fused, b_fused, nheads=NHEADS,
                     mxu_dtype=jnp.float32))
    assert jnp.allclose(out_f32, ref, rtol=5e-3, atol=5e-3), \
        "f32-MXU kernel mismatch vs pure-JAX reference"

    print("KERNEL_OK")
</pallas_src>

<mosaic_0001>
module attributes {stable_mosaic.version = 11 : i64} {
  func.func @_head_attention_kernel(%arg0: i32, %arg1: i32, %arg2: memref<1x1x4x32xf32, #tpu.memory_space<vmem>>, %arg3: memref<1x4x32xf32, #tpu.memory_space<vmem>>, %arg4: memref<1x32x96xf32, #tpu.memory_space<vmem>>, %arg5: memref<1x1x96xf32, #tpu.memory_space<vmem>>, %arg6: memref<1x1x4x32xf32, #tpu.memory_space<vmem>>) attributes {dimension_semantics = [#tpu.dimension_semantics<parallel>, #tpu.dimension_semantics<parallel>], iteration_bounds = array<i64: 2, 2>, scalar_prefetch = 0 : i64, scratch_operands = 0 : i64, tpu.core_type = #tpu.core_type<tc>, window_params = [{transform_indices = @transform_0, window_bounds = array<i64: 1, 1, 4, 32>}, {transform_indices = @transform_1, window_bounds = array<i64: 1, 4, 32>}, {transform_indices = @transform_2, window_bounds = array<i64: 1, 32, 96>}, {transform_indices = @transform_3, window_bounds = array<i64: 1, 1, 96>}, {transform_indices = @transform_4, window_bounds = array<i64: 1, 1, 4, 32>}]} {
    %c0 = arith.constant 0 : index
    %c0_0 = arith.constant 0 : index
    %c0_1 = arith.constant 0 : index
    %c0_2 = arith.constant 0 : index
    %0 = vector.load %arg2[%c0, %c0_0, %c0_1, %c0_2] : memref<1x1x4x32xf32, #tpu.memory_space<vmem>>, vector<1x1x4x32xf32>
    %1 = vector.shape_cast %0 : vector<1x1x4x32xf32> to vector<4x32xf32>
    %c0_3 = arith.constant 0 : index
    %c0_4 = arith.constant 0 : index
    %c0_5 = arith.constant 0 : index
    %2 = vector.load %arg3[%c0_3, %c0_4, %c0_5] : memref<1x4x32xf32, #tpu.memory_space<vmem>>, vector<1x4x32xf32>
    %3 = vector.shape_cast %2 : vector<1x4x32xf32> to vector<4x32xf32>
    %4 = arith.addf %1, %3 : vector<4x32xf32>
    %5 = arith.truncf %4 : vector<4x32xf32> to vector<4x32xbf16>
    %c0_6 = arith.constant 0 : index
    %c0_7 = arith.constant 0 : index
    %c0_8 = arith.constant 0 : index
    %6 = vector.load %arg4[%c0_6, %c0_7, %c0_8] : memref<1x32x96xf32, #tpu.memory_space<vmem>>, vector<1x32x96xf32>
    %7 = vector.shape_cast %6 : vector<1x32x96xf32> to vector<32x96xf32>
    %8 = arith.truncf %7 : vector<32x96xf32> to vector<32x96xbf16>
    %cst = arith.constant dense<0.000000e+00> : vector<4x96xf32>
    %9 = tpu.matmul %5, %8, %cst {dimension_numbers = #tpu.dot_dimension_numbers<[1], [0], [0], [1], [0, 0, 1, 1], [], []>} : vector<4x32xbf16>, vector<32x96xbf16>, vector<4x96xf32> -> vector<4x96xf32>
    %c0_9 = arith.constant 0 : index
    %c0_10 = arith.constant 0 : index
    %c0_11 = arith.constant 0 : index
    %10 = vector.load %arg5[%c0_9, %c0_10, %c0_11] : memref<1x1x96xf32, #tpu.memory_space<vmem>>, vector<1x1x96xf32>
    %11 = vector.shape_cast %10 : vector<1x1x96xf32> to vector<1x96xf32>
    %12 = vector.broadcast %11 : vector<1x96xf32> to vector<4x96xf32>
    %13 = arith.addf %9, %12 : vector<4x96xf32>
    %14 = vector.extract_strided_slice %13 {offsets = [0, 0], sizes = [4, 32], strides = [1, 1]} : vector<4x96xf32> to vector<4x32xf32>
    %15 = vector.extract_strided_slice %13 {offsets = [0, 32], sizes = [4, 32], strides = [1, 1]} : vector<4x96xf32> to vector<4x32xf32>
    %16 = vector.extract_strided_slice %13 {offsets = [0, 64], sizes = [4, 32], strides = [1, 1]} : vector<4x96xf32> to vector<4x32xf32>
    %17 = arith.truncf %14 : vector<4x32xf32> to vector<4x32xbf16>
    %18 = arith.truncf %15 : vector<4x32xf32> to vector<4x32xbf16>
    %19 = tpu.transpose %18, [1, 0] : vector<4x32xbf16> -> vector<32x4xbf16>
    %cst_12 = arith.constant dense<0.000000e+00> : vector<4x4xf32>
    %20 = tpu.matmul %17, %19, %cst_12 {dimension_numbers = #tpu.dot_dimension_numbers<[1], [0], [0], [1], [0, 0, 1, 1], [], []>} : vector<4x32xbf16>, vector<32x4xbf16>, vector<4x4xf32> -> vector<4x4xf32>
    %cst_13 = arith.constant dense<0xFF800000> : vector<4xf32>
    %21 = vector.multi_reduction <maximumf>, %20, %cst_13 [1] : vector<4x4xf32> to vector<4xf32>
    %22 = vector.shape_cast %21 : vector<4xf32> to vector<4x1xf32>
    %23 = vector.broadcast %22 : vector<4x1xf32> to vector<4x4xf32>
    %24 = arith.subf %20, %23 : vector<4x4xf32>
    %25 = math.exp %24 : vector<4x4xf32>
    %cst_14 = arith.constant dense<0.000000e+00> : vector<4xf32>
    %26 = vector.multi_reduction <add>, %25, %cst_14 [1] : vector<4x4xf32> to vector<4xf32>
    %27 = vector.shape_cast %26 : vector<4xf32> to vector<4x1xf32>
    %28 = arith.truncf %25 : vector<4x4xf32> to vector<4x4xbf16>
    %29 = arith.truncf %16 : vector<4x32xf32> to vector<4x32xbf16>
    %cst_15 = arith.constant dense<0.000000e+00> : vector<4x32xf32>
    %30 = tpu.matmul %28, %29, %cst_15 {dimension_numbers = #tpu.dot_dimension_numbers<[1], [0], [0], [1], [0, 0, 1, 1], [], []>} : vector<4x4xbf16>, vector<4x32xbf16>, vector<4x32xf32> -> vector<4x32xf32>
    %31 = tpu.reciprocal %27 {approx = true} : vector<4x1xf32> -> vector<4x1xf32>
    %32 = vector.broadcast %31 : vector<4x1xf32> to vector<4x32xf32>
    %33 = arith.mulf %30, %32 : vector<4x32xf32>
    %c0_16 = arith.constant 0 : index
    %c0_17 = arith.constant 0 : index
    %c0_18 = arith.constant 0 : index
    %c0_19 = arith.constant 0 : index
    %34 = vector.load %arg6[%c0_16, %c0_17, %c0_18, %c0_19] : memref<1x1x4x32xf32, #tpu.memory_space<vmem>>, vector<1x1x4x32xf32>
    %35 = vector.shape_cast %34 : vector<1x1x4x32xf32> to vector<4x32xf32>
    %36 = vector.shape_cast %33 : vector<4x32xf32> to vector<1x1x4x32xf32>
    tpu.vector_store %arg6[%c0_16, %c0_17, %c0_18, %c0_19], %36 {strides = array<i32>} : memref<1x1x4x32xf32, #tpu.memory_space<vmem>>, vector<1x1x4x32xf32>,
    return
  }
  func.func @transform_0(%arg0: i32, %arg1: i32) -> (i32, i32, i32, i32) {
    %c0_i32 = arith.constant 0 : i32
    %c0_i32_0 = arith.constant 0 : i32
    %c0_i32_1 = arith.constant 0 : i32
    return %arg1, %arg0, %c0_i32, %c0_i32_0 : i32, i32, i32, i32
  }
  func.func @transform_1(%arg0: i32, %arg1: i32) -> (i32, i32, i32) {
    %c0_i32 = arith.constant 0 : i32
    %c0_i32_0 = arith.constant 0 : i32
    %c0_i32_1 = arith.constant 0 : i32
    return %arg0, %c0_i32, %c0_i32_0 : i32, i32, i32
  }
  func.func @transform_2(%arg0: i32, %arg1: i32) -> (i32, i32, i32) {
    %c0_i32 = arith.constant 0 : i32
    %c0_i32_0 = arith.constant 0 : i32
    %c0_i32_1 = arith.constant 0 : i32
    return %arg0, %c0_i32, %c0_i32_0 : i32, i32, i32
  }
  func.func @transform_3(%arg0: i32, %arg1: i32) -> (i32, i32, i32) {
    %c0_i32 = arith.constant 0 : i32
    %c0_i32_0 = arith.constant 0 : i32
    %c0_i32_1 = arith.constant 0 : i32
    return %arg0, %c0_i32, %c0_i32_0 : i32, i32, i32
  }
  func.func @transform_4(%arg0: i32, %arg1: i32) -> (i32, i32, i32, i32) {
    %c0_i32 = arith.constant 0 : i32
    %c0_i32_0 = arith.constant 0 : i32
    %c0_i32_1 = arith.constant 0 : i32
    return %arg1, %arg0, %c0_i32, %c0_i32_0 : i32, i32, i32, i32
  }
}

</mosaic_0001>

<bundles_post_ra>
// kernel: tpu_custom_call.1
= control target key start
LH: loop header
LB: loop body
LE: loop exit
PB: predicated region body
PF: predicated region fallthrough
CT: control target
= control target key end

     0   :  { %s1353_s0 = inlined_call_operand.hbm [shape: f32[2,2,4,32], index: 0, kind: input, shape index: {}]   ;;  %s1354_s1 = inlined_call_operand.hbm [shape: f32[2,4,32], index: 1, kind: input, shape index: {}]   ;;  %s1355_s2 = inlined_call_operand.hbm [shape: f32[2,32,96], index: 2, kind: input, shape index: {}]   ;;  %s1356_s3 = inlined_call_operand.vmem [shape: f32[2,1,96], index: 3, kind: input, shape index: {}]   ;;  %s1357_s4 = inlined_call_operand.hbm [shape: f32[2,2,4,32], index: 4, kind: output, shape index: {}]  }
   0x1   :  { %1373 = sst [smem:[#allocation22_spill]] %s1354_s1 }
   0x2   :  { %1374 = sst [smem:[#allocation23_spill]] %s1356_s3 }
   0x3   :  { %1375 = sst [smem:[#allocation24_spill]] %s1357_s4 }
   0x4   :  { %9 = vsyncpa [#allocation3], 0 }
   0x5   :  { %11 = vsyncpa [#allocation3 + $0x1], 0 }
   0x6   :  { %12 = vsyncpa [#allocation6], 0 }
   0x7   :  { %14 = vsyncpa [#allocation6 + $0x1], 0 }
   0x8   :  { %15 = vsyncpa [#allocation4], 0 }
   0x9   :  { %17 = vsyncpa [#allocation4 + $0x1], 0  ;;  %s1070_s15 = smov 0   ;;  %s1072_s16 = smov 0  }
   0xa   :  { %s1074_s17 = smov 0   ;;  %s1076_s18 = smov 0  }
   0xb   :  { %s1078_s19 = smov 0   ;;  %s1080_s20 = smov 0  }
   0xc   :  { %s1082_s21 = smov 0   ;;  %s1084_s22 = smov 0  }
   0xd   :  { %s1086_s23 = smov 0   ;;  %s1088_s24 = smov 0  }
   0xe   :  { %s1090_s25 = smov 0  }
   0xf LB: > { %1376 = sst [smem:[#allocation12_spill]] %s997_s16  ;;  %s1124_s26 = sadd.s32 4294967295, %s1033_s25   ;;  %s1033_s25 = sphi %s1090_s25, %s23_s25   ;;  %s1029_s24 = sphi %s1088_s24, %s1421_s24   ;;  %s1025_s23 = sphi %s1086_s23, %s1420_s23   ;;  %s1021_s22 = sphi %s1084_s22, %s1419_s22   ;;  %s1017_s21 = sphi %s1082_s21, %s1418_s21   ;;  %s1013_s20 = sphi %s1080_s20, %s1417_s20   ;;  %s1009_s19 = sphi %s1078_s19, %s1416_s19   ;;  %s1005_s18 = sphi %s1076_s18, %s1415_s18   ;;  %s1001_s17 = sphi %s1074_s17, %s1414_s17   ;;  %s997_s16 = sphi %s1072_s16, %s1413_s16   ;;  %s993_s15 = sphi %s1070_s15, %s1410_s15  }
  0x10   : > { %1377 = sst [smem:[#allocation13_spill]] %s1005_s18  ;;  %p52_p0 = scmp.eq.s32.totalorder %s1033_s25, 0 }
  0x11   : > { %1378 = sst [smem:[#allocation14_spill]] %s1017_s21  ;;  %p58_p1 = scmp.eq.s32.totalorder %s1124_s26, 0 }
  0x12   : > { %1379 = sst [smem:[#allocation15_spill]] %s1021_s22  ;;  %p77_p2 = scmp.ne.s32.totalorder %s1001_s17, %s997_s16 }
  0x13   : > { %1380 = sst [smem:[#allocation16_spill]] %s1124_s26  ;;  %p83_p3 = scmp.ne.s32.totalorder %s997_s16, %s993_s15 }
  0x14   : > { %p1359_p4 = scmp.lt.s32.totalorder %s1033_s25, 4  ;;  %p79_p5 = por %p77_p2, %p52_p0 }
  0x15   : > { %p1137_p6 = por %p83_p3, %p58_p1  ;;  %s207_s29 = sand.u32 1, %s1033_s25  }
  0x16   : > { %s209_s30 = sand.u32 1, %s1001_s17   ;;  %s657_s6 = sshll.u32 %s1029_s24, 6 }
  0x17   : > { %s1381_s28 = scalar_select %p1137_p6, 1, 0 }
  0x18   : > { %s656_s5 = sshll.u32 %s209_s30, 2  ;;  %s1383_s1 = sld [smem:[#allocation22_spill]] }
  0x19   : > { %1382 = sst [smem:[#allocation17_spill]] %s1381_s28  ;;  %s211_s10 = scalar_lea.vmem [#allocation5], %s656_s5 }
  0x1a   : > { %s218_s11 = sshll.u32 %s211_s10, 4  ;;  %p1149_p7 = pnand %p1359_p4, %p79_p5  ;;  %s219_s11 = int_to_ptr.vmem [resolvable:$true] %s218_s11 }
  0x1b   : > { %s658_s13 = sshll.u32 %s209_s30, 5  ;;  %p661_p8 = scmp.ge.s32.totalorder %s1033_s25, 1 }
  0x1c   : > { %s1154_s14 = scalar_lea.sflag [#allocation6], %s207_s29  ;;  %p1358_p9 = pneg %p1149_p7 }
  0x1d   : > { %s838_s15 = scalar_lea.vmem %s219_s11, 64  ;;  %s1035_s5 = smov [#allocation5]  }
  0x1e   : > { %s216_s9 = scalar_lea.hbm %s1383_s1, %s657_s6  ;;  %p839_p10 = scmp.ne.s32.totalorder %s219_s11, %s838_s15 }
  0x1f   : > { %s843_s6 = sshll.u32 %s1035_s5, 4  ;;  %s844_s6 = int_to_ptr.vmem [resolvable:$false] %s843_s6 }
  0x20   : > { %p841_p11 = pnand %p839_p10, %p1358_p9  ;;  %s845_s7 = scalar_lea.vmem %s844_s6, 128 }
  0x21   : > { %p846_p13 = scmp.lt.s32.totalorder %s219_s11, %s844_s6  ;;  %p847_p2 = scmp.lt.s32.totalorder %s845_s7, %s838_s15 }
  0x22   : > { %p842_p12 = pneg %p841_p11 }
  0x23   : > { %p848_p3 = por %p847_p2, %p846_p13 }
  0x25   : > { %p849_p5 = pnand %p848_p3, %p842_p12 }
  0x27   : > { %852 = shalt.err (!%p849_p5)
}
  0x28   : > { %717 = dma.hbm_to_vmem [thread:$0]  (!%p1149_p7), %s216_s9, 64, %s219_s11, %s1154_s14  }
  0x29   : > { %s229_s29 = scalar_lea.vmem [#allocation7], %s658_s13  ;;  %p250_p10 = scmp.lt.s32.totalorder %s1033_s25, 5 }
  0x2a   : > { %s236_s30 = sshll.u32 %s229_s29, 4  ;;  %s650_s10 = sadd.s32 4294967294, %s1033_s25   ;;  %s1165_s30 = int_to_ptr.vmem [resolvable:$true] %s236_s30 }
  0x2b   : > { %p1169_p11 = pnand %p661_p8, %p250_p10  ;;  %s32_s15 = sadd.s32 1, %s1025_s23 }
  0x2c   : > { %p33_p12 = scmp.ge.s32.totalorder %s32_s15, 2  ;;  %s35_s5 = sadd.s32 1, %s1029_s24 }
  0x2d   : > { %s44_s9 = sadd.s32 1, %s1013_s20  ;;  %p51_p13 = scmp.ne.s32.totalorder %s1013_s20, %s1009_s19 }
  0x2e   : > { %s1423_s15 = smov (%p33_p12, %s32_s15), 0  ;;  %s1425_s5 = smov (!%p33_p12, %s35_s5), %s1029_s24 }
  0x2f   : > { %1386 = sst [smem:[#allocation18_spill]] %s1423_s15  ;;  %s39_s11 = ssub.s32 %s1025_s23, %s1423_s15 }
  0x30   : > { %p1186_p8 = por %p52_p0, %p51_p13  ;;  %p37_p2 = scmp.ge.s32.totalorder %s1425_s5, 2 }
  0x31   : > { %p57_p3 = scmp.ne.s32.totalorder %s1009_s19, %s1005_s18  ;;  %p161_p5 = scmp.eq.s32.totalorder %s1124_s26, 3 }
  0x32   : > { %p167_p10 = scmp.eq.s32.totalorder %s650_s10, 3  ;;  %s1427_s5 = smov (%p37_p2, %s1425_s5), 0 }
  0x33   : > { %1388 = sst [smem:[#allocation19_spill]] %s1427_s5  ;;  %p1197_p12 = por %p58_p1, %p57_p3 }
  0x34   : > { %p1201_p9 = por %p161_p5, %p51_p13  ;;  %s40_s29 = ssub.s32 %s1029_s24, %s1427_s5 }
  0x35   : > { %p1207_p0 = por %p167_p10, %p57_p3  ;;  %s41_s10 = sor.u32 %s40_s29, %s39_s11 }
  0x36   : > { %s1390_s7 = scalar_select %p1201_p9, 1, 0 }
  0x37   : > { %s1392_s27 = scalar_select %p1207_p0, 1, 0 }
  0x38   : > { %1391 = sst [smem:[#allocation20_spill]] %s1390_s7  ;;  %p68_p2 = scmp.eq.s32.totalorder %s40_s29, 0 }
  0x39   : > { %1393 = sst [smem:[#allocation21_spill]] %s1392_s27  ;;  %p42_p4 = scmp.eq.s32.totalorder %s41_s10, 0 }
  0x3a   : > { %s187_s1 = sand.u32 1, %s1013_s20   ;;  %s1394_s15 = sadd.s32 1, %s1001_s17 }
  0x3b   : > { %s1215_s18 = scalar_select %p68_p2, %s1001_s17, %s1394_s15  }
  0x3c   : > { %s1218_s4 = scalar_select %p42_p4, %s1013_s20, %s44_s9  }
  0x3d   : > { %s653_s21 = sshll.u32 %s187_s1, 2  ;;  %s654_s3 = sshll.u32 %s1025_s23, 1 }
  0x3e   : > { %s196_s7 = sadd.s32 %s1029_s24, %s654_s3  ;;  %s191_s5 = scalar_lea.vmem [#allocation2], %s653_s21 }
  0x3f   : > { %s200_s22 = sshll.u32 %s191_s5, 4  ;;  %s655_s28 = sshll.u32 %s196_s7, 6  ;;  %s201_s22 = int_to_ptr.vmem [resolvable:$true] %s200_s22 }
  0x40   : > { %s198_s27 = scalar_lea.hbm %s1353_s0, %s655_s28  ;;  %p1395_p1 = scmp.lt.s32.totalorder %s1033_s25, 4 }
  0x41   : > { %s675_s15 = sshll.u32 %s1029_s24, 9  ;;  %s188_s21 = scalar_lea.sflag [#allocation3], %s187_s1 }
  0x42   : > { %p1229_p13 = pnand %p1395_p1, %p1186_p8  ;;  %s1237_s3 = scalar_lea.hbm %s1355_s2, %s675_s15 }
  0x43   : > { %s866_s5 = scalar_lea.vmem %s201_s22, 64  ;;  %s1036_s16 = smov [#allocation2]  }
  0x44   : > { %p855_p4 = pneg %p1229_p13  ;;  %p867_p3 = scmp.ne.s32.totalorder %s201_s22, %s866_s5 }
  0x45   : > { %s871_s26 = sshll.u32 %s1036_s16, 4  ;;  %s872_s26 = int_to_ptr.vmem [resolvable:$false] %s871_s26 }
  0x46   : > { %p869_p5 = pnand %p867_p3, %p855_p4  ;;  %s873_s28 = scalar_lea.vmem %s872_s26, 128 }
  0x47   : > { %p874_p8 = scmp.lt.s32.totalorder %s201_s22, %s872_s26  ;;  %p875_p2 = scmp.lt.s32.totalorder %s873_s28, %s866_s5 }
  0x48   : > { %p870_p10 = pneg %p869_p5 }
  0x49   : > { %p876_p1 = por %p875_p2, %p874_p8 }
  0x4b   : > { %p877_p0 = pnand %p876_p1, %p870_p10 }
  0x4d   : > { %880 = shalt.err (!%p877_p0)
}
  0x4e   : > { %714 = dma.hbm_to_vmem [thread:$0]  (!%p1229_p13), %s198_s27, 64, %s201_s22, %s188_s21  }
  0x4f   : > { %s894_s1 = scalar_lea.vmem %s1165_s30, 512  ;;  %p1397_p4 = pneg %p1149_p7 }
  0x50   : > { %p895_p9 = scmp.ne.s32.totalorder %s1165_s30, %s894_s1  ;;  %s1037_s13 = smov [#allocation7]  }
  0x51   : > { %s899_s7 = sshll.u32 %s1037_s13, 4  ;;  %s900_s7 = int_to_ptr.vmem [resolvable:$false] %s899_s7 }
  0x52   : > { %p897_p3 = pnand %p895_p9, %p1397_p4  ;;  %s901_s10 = scalar_lea.vmem %s900_s7, 1024 }
  0x53   : > { %p902_p8 = scmp.lt.s32.totalorder %s1165_s30, %s900_s7  ;;  %p903_p10 = scmp.lt.s32.totalorder %s901_s10, %s894_s1 }
  0x54   : > { %p898_p5 = pneg %p897_p3 }
  0x55   : > { %p904_p0 = por %p903_p10, %p902_p8 }
  0x57   : > { %p905_p2 = pnand %p904_p0, %p898_p5 }
  0x59   : > { %908 = shalt.err (!%p905_p2)
}
  0x5a   : > { %s1038_s11 = smov 128   ;;  %s1039_s22 = smov 8  }
  0x5b   : > { %720 = dma.hbm_to_vmem [thread:$0]  (!%p1149_p7), %s1237_s3, 512, %s1165_s30, %s1154_s14, %s1038_s11, %s1038_s11, %s1039_s22  }
  0x5c   : > { %254 = sbr.rel (%p1169_p11) target bundleno = 1002 (0x3ea), region = 36  ;;  %s1257_s27 = sand.u32 (!%p1169_p11), 1, %s1009_s19  }
  0x5d   : > { %s662_s15 = sshll.u32 (!%p1169_p11), %s1257_s27, 2  ;;  %s257_s9 = scalar_lea.sflag (!%p1169_p11), [#allocation3], %s1257_s27 }
  0x5e   : > { %s260_s29 = scalar_lea.vmem (!%p1169_p11), [#allocation2], %s662_s15 }
  0x61   : > { %980 = dma.done.wait (%p1197_p12), %s257_s9, 64  }
  0x62   : > { %982 = vsyncadd (%p1197_p12), %s257_s9, 4294967232  ;;  %s1398_s12 = sld [smem:[#allocation16_spill]] }
  0x63   : > { %s1399_s14 = sld [smem:[#allocation12_spill]] }
  0x68   : > { %s265_s8 = sand.u32 1, %s1398_s12  }
  0x69   : > { %s267_s3 = sand.u32 1, %s1399_s14   ;;  %s266_s5 = scalar_lea.sflag [#allocation6], %s265_s8 }
  0x6a   : > { %s663_s21 = sshll.u32 %s267_s3, 2 }
  0x6b   : > { %s269_s16 = scalar_lea.vmem [#allocation5], %s663_s21 }
  0x6c   : > { %984 = dma.done.wait (%p1137_p6), %s266_s5, 576  }
  0x6d   : > { %986 = vsyncadd (%p1137_p6), %s266_s5, 4294966720  ;;  %v1040_v0 = vmov 0.0   ;;  %s664_s26 = sshll.u32 %s267_s3, 5  ;;  %vm1041_vm0 = vmmov 0   ;;  %s1401_s28 = sld [smem:[#allocation15_spill]]  ;;  %vm337_vm1 = vcmask 261120  }
  0x6e   : > { %683 = vmatprep.subr.bf16.mxu0 %v1040_v0  ;;  %687 = vmatprep.mubr.msk.bf16.mxu0 %vm1041_vm0, %v1040_v0  ;;  %s278_s6 = scalar_lea.vmem [#allocation7], %s664_s26  ;;  %v320_v6 = vld [vmem:[%s260_s29] sm:$0xf]  ;;  %v321_v7 = vld [vmem:[%s269_s16] sm:$0xf]  ;;  %s1402_s10 = sld [smem:[#allocation23_spill]] }
  0x6f   : > { %691 = vmatprep.subr.bf16.mxu1 %v1040_v0  ;;  %693 = vmatprep.mubr.msk.bf16.mxu1 %vm1041_vm0, %v1040_v0  ;;  %v326_v1 = vld [vmem:[%s278_s6 + $0x10] sm:$0xff]  ;;  %v327_v2 = vld [vmem:[%s278_s6 + $0x18] sm:$0xff]  ;;  %v324_v3 = vld [vmem:[%s278_s6] sm:$0xff]  ;;  %v322_v8 = vadd.f32 %v321_v7, %v320_v6  ;;  %s1042_s22 = smov 64   ;;  %s1043_s9 = smov 96   ;;  %vm448_vm2 = vcmask 1041408  }
  0x70   : > { %v329_v4 = vpack.c.bf16 %v327_v2, %v326_v1  ;;  %v325_v5 = vld [vmem:[%s278_s6 + $0x8] sm:$0xff]  ;;  %vm431_vm3 = vcmask 27648   ;;  %s1403_s29 = sld [smem:[#allocation14_spill]]  ;;  %vm444_vm4 = vcmask 31744   ;;  %s315_s3 = scalar_lea.vmem [#allocation8], %s662_s15  ;;  %vm494_vm5 = vcmask 257024  }
  0x71   : > { %v328_v9 = vpack.c.bf16 %v325_v5, %v324_v3  ;;  %v323_v10 = vpack.c.bf16 %v322_v8, %v322_v8  ;;  %s1404_s30 = sld [smem:[#allocation20_spill]]  ;;  %s512_s21 = sshll.u32 %s315_s3, 4  ;;  %s1293_s21 = int_to_ptr.vmem [resolvable:$true] %s512_s21 }
  0x72   : > { %684 = vmatpush3.bf16.msra.mxu0 %v329_v4  ;;  %s1405_s26 = sld [smem:[#allocation24_spill]]  ;;  %s909_s15 = scalar_lea.vmem %s1293_s21, 64 }
  0x73   : > { %685 = vmatprep.subr.bf16.mxu0 %v1040_v0  ;;  %p316_p6 = scmp.lt.s32.totalorder %s1401_s28, 1  ;;  %p910_p7 = scmp.ne.s32.totalorder %s1293_s21, %s909_s15 }
  0x75   : > { %s317_s1 = scalar_select %p316_p6, %s1401_s28, 1 }
  0x76   : > { %686 = vmatpush3.bf16.msra.mxu0 %v328_v9  ;;  %s671_s12 = sshll.u32 %s1403_s29, 1 }
  0x77   : > { %697 = vmatprep.subr.bf16.mxu0 %v1040_v0  ;;  %s318_s11 = scalar_lea.vmem %s1402_s10, %s317_s1  ;;  %s508_s14 = sadd.s32 %s1401_s28, %s671_s12 }
  0x78   : > { %v666_v11 = vld [vmem:[%s318_s11] ss:$0 sm:$0xff]  ;;  %s672_s8 = sshll.u32 %s508_s14, 6  ;;  %s497_s28 = scalar_lea.sflag [#allocation4], %s1257_s27 }
  0x79   : > { %688 = vmatmul.mubr.msk.bf16.vlgmr.msra.gmra.mxu0 %vm337_vm1, %v323_v10  ;;  %s1291_s6 = scalar_lea.hbm %s1405_s26, %s672_s8  ;;  %p1406_p9 = scmp.ne.s32.totalorder %s1404_s30, 0 }
  0x7a   : > { %699 = vmatprep.mubr.msk.bf16.mxu0 %vm1041_vm0, %v1040_v0  ;;  %s1044_s1 = smov [#allocation8]  }
  0x7b   : > { %p911_p11 = pnand %p910_p7, %p1406_p9  ;;  %s913_s13 = sshll.u32 %s1044_s1, 4  ;;  %s914_s13 = int_to_ptr.vmem [resolvable:$false] %s913_s13 }
  0x7c   : > { %s915_s7 = scalar_lea.vmem %s914_s13, 128  ;;  %p916_p13 = scmp.lt.s32.totalorder %s1293_s21, %s914_s13 }
  0x7d   : > { %p912_p12 = pneg %p911_p11  ;;  %p917_p1 = scmp.lt.s32.totalorder %s915_s7, %s909_s15 }
  0x7f   : > { %p918_p4 = por %p917_p1, %p916_p13 }
  0x81   : > { %p919_p3 = pnand %p918_p4, %p912_p12 }
 0x139   : > { %v375_v12 = vpop.f32.mrf.mxu0 }
 0x13a   : > { %v376_v13 = vadd.f32 %v666_v11, %v375_v12 }
 0x13b   : > { %v689_v14 = vpop.f32.mrf.mxu0 }
 0x13c   : > { %v381_v15 = vpack.c.bf16 %v376_v13, %v376_v13 }
 0x13d   : > { %v378_v16 = vpop.f32.mrf.mxu0 }
 0x13e   : > { %442 = vrot.lane.b32.xlu1 %v381_v15, %s1042_s22  ;;  %383 = vrot.lane.b32.xlu0 %v381_v15, %s1043_s9 }
 0x13f   : > { %v690_v17 = vpop.f32.mrf.mxu0 }
 0x1b0   : > { %v443_v18 = vpop.permute.xlu1 %442  ;;  %v384_v19 = vpop.permute.xlu0 %383 }
 0x1b1   : > { %v450_v20 = vsel %vm448_vm2, %v443_v18, 0  ;;  %v389_v21 = vsel %vm337_vm1, %v384_v19, 0 }
 0x1b2   : > { %692 = vmatpush3.bf16.xpose.msra.mxu1 %v389_v21  ;;  %698 = vmatpush3.bf16.msra.mxu0 %v450_v20 }
 0x1b9   : > { %694 = vmatmul.mubr.msk.bf16.vlgmr.msra.gmra.mxu1 %vm337_vm1, %v381_v15 }
 0x279   : > { %v425_v22 = vpop.f32.mrf.mxu1 }
 0x27a   : > { %v432_v23 = vsel %vm431_vm3, %v425_v22, -inf }
 0x27b   : > { %433 = vmax.xlane.f32.xlu0 %v432_v23  ;;  %v695_v24 = vpop.f32.mrf.mxu1 }
 0x27d   : > { %v428_v25 = vpop.f32.mrf.mxu1 }
 0x27f   : > { %v696_v26 = vpop.f32.mrf.mxu1 }
 0x304   : > { %v434_v27 = vpop.xlane.xlu0 %433 }
 0x305   : > { %v435_v28 = vsub.f32 %v425_v22, %v434_v27 }
 0x307   : > { %v436_v29 = vmul.f32 1.442695, %v435_v28 }
 0x309   : > { %821 = vpow2.f32 %v436_v29 }
 0x316   : > { %v822_v30 = vpop.eup %821 }
 0x317   : > { %v438_v31 = vsel %vm431_vm3, %v822_v30, 0.0  ;;  %v441_v32 = vpack.c.bf16 %v822_v30, %v822_v30 }
 0x318   : > { %439 = vadd.xlane.f32.xlu1 %v438_v31 }
 0x319   : > { %700 = vmatmul.mubr.msk.bf16.vlgmr.msra.gmra.mxu0 %vm444_vm4, %v441_v32 }
 0x3a1   : > { %v440_v33 = vpop.xlane.xlu1 %439 }
 0x3a2   : > { %823 = vrcp.f32 %v440_v33 }
 0x3af   : > { %v824_v34 = vpop.eup %823 }
 0x3d9   : > { %v486_v35 = vpop.f32.mrf.mxu0 }
 0x3da   : > { %v493_v36 = vmul.f32 %v824_v34, %v486_v35 }
 0x3db   : > { %v701_v37 = vpop.f32.mrf.mxu0 }
 0x3dc   : > { %495 = vst.msk [vmem:[%s315_s3] sm:$0xf] %vm494_vm5, %v493_v36 }
 0x3dd   : > { %v489_v38 = vpop.f32.mrf.mxu0 }
 0x3de   : > { %922 = shalt.err (!%p919_p3)
}
 0x3df   : > { %s923_s10 = scalar_lea.hbm %s1291_s6, 64  ;;  %s927_s22 = scalar_lea.hbm %s1405_s26, 256 }
 0x3e0   : > { %p924_p5 = scmp.ne.s32.totalorder %s1291_s6, %s923_s10  ;;  %p928_p0 = scmp.lt.s32.totalorder %s1291_s6, %s1405_s26 }
 0x3e1   : > { %p929_p2 = scmp.lt.s32.totalorder %s927_s22, %s923_s10 }
 0x3e2   : > { %p925_p8 = pnand %p924_p5, %p1406_p9 }
 0x3e3   : > { %p930_p6 = por %p929_p2, %p928_p0 }
 0x3e4   : > { %p926_p10 = pneg %p925_p8 }
 0x3e6   : > { %p931_p7 = pnand %p930_p6, %p926_p10 }
 0x3e8   : > { %934 = shalt.err (!%p931_p7)
}
 0x3e9   : > { %709 = dma.vmem_to_hbm [thread:$0]  (%p1406_p9), %s1293_s21, 64, %s1291_s6, %s497_s28   ;;  %v702_v39 = vpop.f32.mrf.mxu0 }
 0x3ea PF: > { %s1407_s12 = sld [smem:[#allocation13_spill]]  ;;  %p726_p11 = scmp.ge.s32.totalorder %s1033_s25, 2 }
 0x3eb   : > { %s1408_s14 = sld [smem:[#allocation21_spill]] }
 0x3f0   : > { %s524_s8 = sand.u32 1, %s1407_s12  }
 0x3f1   : > { %p1409_p12 = scmp.ne.s32.totalorder %s1408_s14, 0  ;;  %s525_s3 = scalar_lea.sflag [#allocation4], %s524_s8 }
 0x3f3   : > { %p722_p13 = pnand %p726_p11, %p1409_p12 }
 0x3f5   : > { %p723_p1 = pneg %p722_p13 }
 0x3f7   : > { %988 = dma.done.wait (%p723_p1), %s525_s3, 64  }
 0x3f8   : > { %990 = vsyncadd (%p723_p1), %s525_s3, 4294967232  ;;  %s23_s25 = sadd.s32 1, %s1033_s25   ;;  %s1410_s15 = sld [smem:[#allocation12_spill]] }
 0x3f9   : > { %p20_p4 = scmp.ge.s32.totalorder %s23_s25, 6   ;;  %s1411_s30 = sld [smem:[#allocation18_spill]] }
 0x3fa   : > { %s1412_s5 = sld [smem:[#allocation19_spill]]  ;;  %s1413_s16 = smov %s1001_s17 }
 0x3fb   : > { %s1414_s17 = smov %s1215_s18  ;;  %s1415_s18 = smov %s1009_s19 }
 0x3fc   : > { %s1416_s19 = smov %s1013_s20  ;;  %s1417_s20 = smov %s1218_s4 }
 0x3fd   : > { %s1418_s21 = smov %s1025_s23  ;;  %s1419_s22 = smov %s1029_s24 }
 0x3fe   :  { %22 = sbr.rel (!%p20_p4) target bundleno = 15 (0xf), region = 108 }
 0x3ff   : > { %s1420_s23 = smov %s1411_s30 }
 0x400   : > { %s1421_s24 = smov %s1412_s5 }
 0x403   :  { %530 = vsyncpa [#allocation3], 1 }
 0x404   :  { %532 = vsyncpa [#allocation3 + $0x1], 1 }
 0x405   :  { %533 = vsyncpa [#allocation6], 1 }
 0x406   :  { %535 = vsyncpa [#allocation6 + $0x1], 1 }
 0x407   :  { %536 = vsyncpa [#allocation4], 1 }
 0x408   :  { %538 = vsyncpa [#allocation4 + $0x1], 1 }

</bundles_post_ra>
